<compile_context>
chip_gen: v6e
topology: v6e:2x2x1
jax: 0.10.0
libtpu: 0.0.40
codegen_flags: <defaults>
</compile_context>

<pallas_src>
import functools

import jax
import jax.numpy as jnp
from jax.experimental import pallas as pl
from jax.experimental.pallas import tpu as pltpu


def _round_up(x: int, m: int) -> int:
    return ((x + m - 1) // m) * m


def _ridge_gram_kernel(x_ref, xt_ref, y_ref, o_ref, a_ref, *, n, lam):
    # x_ref:  (Nr, D)  points of one batch element (rows zero-padded N -> Nr)
    # xt_ref: (D, Nc)  the same points, transposed (cols zero-padded N -> Nc)
    # y_ref:  (1, Nc)  targets, zero-padded
    # o_ref:  (1, Nc)  predictions out (lanes [0, n) valid)
    # a_ref:  (Nr, Nc) f32 scratch: working copy of M = X X^T + lam*I
    nr, nc = a_ref.shape

    # Regularized Gram matrix on the MXU.  Zero-padded points contribute 0.
    gram = jnp.dot(x_ref[...].astype(jnp.float32),
                   xt_ref[...].astype(jnp.float32),
                   preferred_element_type=jnp.float32)               # (Nr, Nc)
    r_ids = jax.lax.broadcasted_iota(jnp.int32, (nr, nc), 0)
    c_ids = jax.lax.broadcasted_iota(jnp.int32, (nr, nc), 1)
    a_ref[...] = gram + jnp.where(r_ids == c_ids, jnp.float32(lam), 0.0)

    lane_ids = jax.lax.broadcasted_iota(jnp.int32, (1, nc), 1)        # (1, Nc)
    head_ids = jax.lax.broadcasted_iota(jnp.int32, (1, nr), 1)        # (1, Nr)
    y_row = y_ref[...].astype(jnp.float32)                            # (1, Nc)

    def body(j, w):
        # Pivot row j of the partially eliminated matrix.  Its first Nr lanes
        # double as the multiplier column (the trailing Schur complement stays
        # symmetric), so no transpose / column read is ever needed.
        row = a_ref[pl.ds(j, 1), :]                                   # (1, Nc)
        row_head = a_ref[pl.ds(j, 1), :nr]                            # (1, Nr)

        # Pivot d = A[j, j] and current substituted target w[j].
        at_j = lane_ids == j
        d = jnp.sum(jnp.where(at_j, row, 0.0), axis=1, keepdims=True)    # (1,1)
        w_j = jnp.sum(jnp.where(at_j, w, 0.0), axis=1, keepdims=True)    # (1,1)
        inv_d = pl.reciprocal(d, approx=False)   # exact: feeds the recursion

        # Multipliers L[r, j] = A[j, r] / d, restricted to j < r < n.
        sel = (lane_ids > j) & (lane_ids < n)
        sel_head = (head_ids > j) & (head_ids < n)
        m_row = jnp.where(sel, row * inv_d, 0.0)                      # (1, Nc)
        m_head = jnp.where(sel_head, row_head * inv_d, 0.0)           # (1, Nr)

        # Rank-1 Schur-complement update of the trailing block (rows/cols > j);
        # padded rows/columns receive exactly 0.
        a_ref[...] = a_ref[...] - jnp.einsum(
            'ia,ib->ab', m_head, row, preferred_element_type=jnp.float32)

        # Forward substitution of the targets: w becomes L^{-1} y causally.
        return w - m_row * w_j

    unroll = True if n <= 64 else 2
    w = jax.lax.fori_loop(0, n - 1, body, y_row, unroll=unroll)

    # Prefix-ridge predictions: pred_i = y_i - w_i (so pred_0 = 0); padded
    # lanes remain exactly 0.  Single lane-dense store.
    o_ref[...] = (y_row - w).astype(o_ref.dtype)


def ridge_forward(data, targets, lam):
    """data: [B, N, D]; targets: [B, N]; returns preds [B, N]."""
    B, N, D = data.shape
    assert targets.shape == (B, N)

    nr = _round_up(N, 8)     # sublane-rounded row count of the working matrix
    nc = _round_up(N, 128)   # lane-dense column count (also the output width)

    # Zero padding is inert: padded points contribute 0 to the Gram matrix and
    # are masked out of the elimination, so predictions are unchanged.
    x_p = jnp.pad(data, ((0, 0), (0, nr - N), (0, 0)))                    # (B, Nr, D)
    xt_p = jnp.pad(jnp.swapaxes(data, 1, 2),
                   ((0, 0), (0, 0), (0, nc - N)))                         # (B, D, Nc)
    y_p = jnp.pad(targets, ((0, 0), (0, nc - N))).reshape(B, 1, nc)       # (B, 1, Nc)

    kernel = functools.partial(_ridge_gram_kernel, n=N, lam=float(lam))

    # Explicit VMEM budget: double-buffered inputs/outputs + working matrix.
    elt = jnp.dtype(data.dtype).itemsize
    need = 2 * (nr * D + D * nc + 2 * nc) * elt + nr * nc * 4 + (2 << 20)
    vmem_limit = int(min(max(need, 4 << 20), 48 << 20))   # safe on v7x (64 MiB)

    out = pl.pallas_call(
        kernel,
        out_shape=jax.ShapeDtypeStruct((B, 1, nc), data.dtype),
        grid_spec=pltpu.PrefetchScalarGridSpec(
            num_scalar_prefetch=0,
            grid=(B,),
            in_specs=[
                pl.BlockSpec((None, nr, D), lambda b: (b, 0, 0)),
                pl.BlockSpec((None, D, nc), lambda b: (b, 0, 0)),
                pl.BlockSpec((None, 1, nc), lambda b: (b, 0, 0)),
            ],
            out_specs=pl.BlockSpec((None, 1, nc), lambda b: (b, 0, 0)),
            scratch_shapes=[pltpu.VMEM((nr, nc), jnp.float32)],
        ),
        compiler_params=pltpu.CompilerParams(
            dimension_semantics=("parallel",),
            vmem_limit_bytes=vmem_limit,
        ),
    )(x_p, xt_p, y_p)
    return out[:, 0, :N]


def _ref_forward(data, targets, lam):
    """Pure-JAX reference mirroring the PyTorch module literally."""
    B, N, D = data.shape
    y = targets[..., None]
    eye = lam * jnp.eye(D, dtype=data.dtype)
    preds = [jnp.zeros((B,), dtype=data.dtype)]
    for i in range(1, N):
        X = data[:, :i]
        Y = y[:, :i]
        XT = jnp.swapaxes(X, 1, 2)
        XT_Y = XT @ Y
        A = XT @ X + eye
        ws = jnp.linalg.solve(A, XT_Y)
        pred = (data[:, i:i + 1] @ ws)[:, 0, 0]
        preds.append(pred)
    return jnp.stack(preds, axis=1)


if __name__ == "__main__":
    # Small shapes consistent with the module: batch=2, n_points=8, n_dims=32.
    batch, n_points, n_dims = 2, 8, 32
    lam = 1.0

    key = jax.random.PRNGKey(0)
    kd, kt = jax.random.split(key)
    data = jax.random.normal(kd, (batch, n_points, n_dims), dtype=jnp.float32)
    targets = jax.random.normal(kt, (batch, n_points), dtype=jnp.float32)

    preds = jax.block_until_ready(ridge_forward(data, targets, lam))

    ref = _ref_forward(data, targets, lam)
    assert preds.shape == (batch, n_points)
    err = jnp.max(jnp.abs(preds - ref))
    assert jnp.allclose(preds, ref, atol=1e-3, rtol=1e-3), f"max abs err {err}"

    print("KERNEL_OK")
</pallas_src>

<mosaic_0001>
module attributes {stable_mosaic.version = 11 : i64} {
  func.func @_ridge_gram_kernel(%arg0: i32, %arg1: memref<1x8x32xf32, #tpu.memory_space<vmem>>, %arg2: memref<1x32x128xf32, #tpu.memory_space<vmem>>, %arg3: memref<1x1x128xf32, #tpu.memory_space<vmem>>, %arg4: memref<1x1x128xf32, #tpu.memory_space<vmem>>, %arg5: memref<8x128xf32, #tpu.memory_space<vmem>>) attributes {dimension_semantics = [#tpu.dimension_semantics<parallel>], iteration_bounds = array<i64: 2>, scalar_prefetch = 0 : i64, scratch_operands = 1 : i64, tpu.core_type = #tpu.core_type<tc>, window_params = [{transform_indices = @transform_0, window_bounds = array<i64: 1, 8, 32>}, {transform_indices = @transform_1, window_bounds = array<i64: 1, 32, 128>}, {transform_indices = @transform_2, window_bounds = array<i64: 1, 1, 128>}, {transform_indices = @transform_3, window_bounds = array<i64: 1, 1, 128>}]} {
    %c0 = arith.constant 0 : index
    %c0_0 = arith.constant 0 : index
    %c0_1 = arith.constant 0 : index
    %0 = vector.load %arg1[%c0, %c0_0, %c0_1] : memref<1x8x32xf32, #tpu.memory_space<vmem>>, vector<1x8x32xf32>
    %1 = vector.shape_cast %0 : vector<1x8x32xf32> to vector<8x32xf32>
    %c0_2 = arith.constant 0 : index
    %c0_3 = arith.constant 0 : index
    %c0_4 = arith.constant 0 : index
    %2 = vector.load %arg2[%c0_2, %c0_3, %c0_4] : memref<1x32x128xf32, #tpu.memory_space<vmem>>, vector<1x32x128xf32>
    %3 = vector.shape_cast %2 : vector<1x32x128xf32> to vector<32x128xf32>
    %cst = arith.constant dense<0.000000e+00> : vector<8x128xf32>
    %4 = tpu.matmul %1, %3, %cst {dimension_numbers = #tpu.dot_dimension_numbers<[1], [0], [0], [1], [0, 0, 1, 1], [], []>} : vector<8x32xf32>, vector<32x128xf32>, vector<8x128xf32> -> vector<8x128xf32>
    %5 = tpu.iota {dimensions = array<i32: 0>} : vector<8x128xi32>
    %6 = tpu.iota {dimensions = array<i32: 1>} : vector<8x128xi32>
    %7 = arith.cmpi eq, %5, %6 : vector<8x128xi32>
    %cst_5 = arith.constant 1.000000e+00 : f32
    %cst_6 = arith.constant 0.000000e+00 : f32
    %8 = vector.broadcast %cst_5 : f32 to vector<8x128xf32>
    %9 = vector.broadcast %cst_6 : f32 to vector<8x128xf32>
    %10 = arith.select %7, %8, %9 : vector<8x128xi1>, vector<8x128xf32>
    %11 = arith.addf %4, %10 : vector<8x128xf32>
    %c0_7 = arith.constant 0 : index
    %c0_8 = arith.constant 0 : index
    %12 = vector.load %arg5[%c0_7, %c0_8] : memref<8x128xf32, #tpu.memory_space<vmem>>, vector<8x128xf32>
    tpu.vector_store %arg5[%c0_7, %c0_8], %11 {strides = array<i32>} : memref<8x128xf32, #tpu.memory_space<vmem>>, vector<8x128xf32>,
    %13 = tpu.iota {dimensions = array<i32: 1>} : vector<1x128xi32>
    %14 = tpu.iota {dimensions = array<i32: 1>} : vector<1x8xi32>
    %c0_9 = arith.constant 0 : index
    %c0_10 = arith.constant 0 : index
    %c0_11 = arith.constant 0 : index
    %15 = vector.load %arg3[%c0_9, %c0_10, %c0_11] : memref<1x1x128xf32, #tpu.memory_space<vmem>>, vector<1x1x128xf32>
    %16 = vector.shape_cast %15 : vector<1x1x128xf32> to vector<1x128xf32>
    %c0_i32 = arith.constant 0 : i32
    %17 = arith.index_cast %c0_i32 : i32 to index
    %c0_12 = arith.constant 0 : index
    %18 = vector.load %arg5[%17, %c0_12] : memref<8x128xf32, #tpu.memory_space<vmem>>, vector<1x128xf32>
    %19 = arith.index_cast %c0_i32 : i32 to index
    %c0_13 = arith.constant 0 : index
    %20 = vector.load %arg5[%19, %c0_13] : memref<8x128xf32, #tpu.memory_space<vmem>>, vector<1x8xf32>
    %21 = vector.broadcast %c0_i32 : i32 to vector<1x128xi32>
    %22 = arith.cmpi eq, %13, %21 : vector<1x128xi32>
    %cst_14 = arith.constant 0.000000e+00 : f32
    %23 = vector.broadcast %cst_14 : f32 to vector<1x128xf32>
    %24 = arith.select %22, %18, %23 : vector<1x128xi1>, vector<1x128xf32>
    %cst_15 = arith.constant dense<0.000000e+00> : vector<1xf32>
    %25 = vector.multi_reduction <add>, %24, %cst_15 [1] : vector<1x128xf32> to vector<1xf32>
    %26 = vector.shape_cast %25 : vector<1xf32> to vector<1x1xf32>
    %cst_16 = arith.constant 0.000000e+00 : f32
    %27 = vector.broadcast %cst_16 : f32 to vector<1x128xf32>
    %28 = arith.select %22, %16, %27 : vector<1x128xi1>, vector<1x128xf32>
    %cst_17 = arith.constant dense<0.000000e+00> : vector<1xf32>
    %29 = vector.multi_reduction <add>, %28, %cst_17 [1] : vector<1x128xf32> to vector<1xf32>
    %30 = vector.shape_cast %29 : vector<1xf32> to vector<1x1xf32>
    %31 = tpu.reciprocal %26 : vector<1x1xf32> -> vector<1x1xf32>
    %32 = vector.broadcast %c0_i32 : i32 to vector<1x128xi32>
    %33 = arith.cmpi sgt, %13, %32 : vector<1x128xi32>
    %c8_i32 = arith.constant 8 : i32
    %34 = vector.broadcast %c8_i32 : i32 to vector<1x128xi32>
    %35 = arith.cmpi slt, %13, %34 : vector<1x128xi32>
    %36 = arith.andi %33, %35 : vector<1x128xi1>
    %37 = vector.broadcast %c0_i32 : i32 to vector<1x8xi32>
    %38 = arith.cmpi sgt, %14, %37 : vector<1x8xi32>
    %c8_i32_18 = arith.constant 8 : i32
    %39 = vector.broadcast %c8_i32_18 : i32 to vector<1x8xi32>
    %40 = arith.cmpi slt, %14, %39 : vector<1x8xi32>
    %41 = arith.andi %38, %40 : vector<1x8xi1>
    %42 = vector.broadcast %31 : vector<1x1xf32> to vector<1x128xf32>
    %43 = arith.mulf %18, %42 : vector<1x128xf32>
    %cst_19 = arith.constant 0.000000e+00 : f32
    %44 = vector.broadcast %cst_19 : f32 to vector<1x128xf32>
    %45 = arith.select %36, %43, %44 : vector<1x128xi1>, vector<1x128xf32>
    %46 = vector.broadcast %31 : vector<1x1xf32> to vector<1x8xf32>
    %47 = arith.mulf %20, %46 : vector<1x8xf32>
    %cst_20 = arith.constant 0.000000e+00 : f32
    %48 = vector.broadcast %cst_20 : f32 to vector<1x8xf32>
    %49 = arith.select %41, %47, %48 : vector<1x8xi1>, vector<1x8xf32>
    %c0_21 = arith.constant 0 : index
    %c0_22 = arith.constant 0 : index
    %50 = vector.load %arg5[%c0_21, %c0_22] : memref<8x128xf32, #tpu.memory_space<vmem>>, vector<8x128xf32>
    "tpu.trace_start"() <{level = 10 : i32, message = "ia,ib->ab"}> : () -> ()
    %cst_23 = arith.constant dense<0.000000e+00> : vector<8x128xf32>
    %51 = tpu.matmul %49, %18, %cst_23 {dimension_numbers = #tpu.dot_dimension_numbers<[0], [0], [1], [1], [0, 1, 1, 1], [], []>} : vector<1x8xf32>, vector<1x128xf32>, vector<8x128xf32> -> vector<8x128xf32>
    "tpu.trace_stop"() : () -> ()
    %52 = arith.subf %50, %51 : vector<8x128xf32>
    %c0_24 = arith.constant 0 : index
    %c0_25 = arith.constant 0 : index
    %53 = vector.load %arg5[%c0_24, %c0_25] : memref<8x128xf32, #tpu.memory_space<vmem>>, vector<8x128xf32>
    tpu.vector_store %arg5[%c0_24, %c0_25], %52 {strides = array<i32>} : memref<8x128xf32, #tpu.memory_space<vmem>>, vector<8x128xf32>,
    %54 = vector.broadcast %30 : vector<1x1xf32> to vector<1x128xf32>
    %55 = arith.mulf %45, %54 : vector<1x128xf32>
    %56 = arith.subf %16, %55 : vector<1x128xf32>
    %c1_i32 = arith.constant 1 : i32
    %57 = arith.index_cast %c1_i32 : i32 to index
    %c0_26 = arith.constant 0 : index
    %58 = vector.load %arg5[%57, %c0_26] : memref<8x128xf32, #tpu.memory_space<vmem>>, vector<1x128xf32>
    %59 = arith.index_cast %c1_i32 : i32 to index
    %c0_27 = arith.constant 0 : index
    %60 = vector.load %arg5[%59, %c0_27] : memref<8x128xf32, #tpu.memory_space<vmem>>, vector<1x8xf32>
    %61 = vector.broadcast %c1_i32 : i32 to vector<1x128xi32>
    %62 = arith.cmpi eq, %13, %61 : vector<1x128xi32>
    %cst_28 = arith.constant 0.000000e+00 : f32
    %63 = vector.broadcast %cst_28 : f32 to vector<1x128xf32>
    %64 = arith.select %62, %58, %63 : vector<1x128xi1>, vector<1x128xf32>
    %cst_29 = arith.constant dense<0.000000e+00> : vector<1xf32>
    %65 = vector.multi_reduction <add>, %64, %cst_29 [1] : vector<1x128xf32> to vector<1xf32>
    %66 = vector.shape_cast %65 : vector<1xf32> to vector<1x1xf32>
    %cst_30 = arith.constant 0.000000e+00 : f32
    %67 = vector.broadcast %cst_30 : f32 to vector<1x128xf32>
    %68 = arith.select %62, %56, %67 : vector<1x128xi1>, vector<1x128xf32>
    %cst_31 = arith.constant dense<0.000000e+00> : vector<1xf32>
    %69 = vector.multi_reduction <add>, %68, %cst_31 [1] : vector<1x128xf32> to vector<1xf32>
    %70 = vector.shape_cast %69 : vector<1xf32> to vector<1x1xf32>
    %71 = tpu.reciprocal %66 : vector<1x1xf32> -> vector<1x1xf32>
    %72 = vector.broadcast %c1_i32 : i32 to vector<1x128xi32>
    %73 = arith.cmpi sgt, %13, %72 : vector<1x128xi32>
    %c8_i32_32 = arith.constant 8 : i32
    %74 = vector.broadcast %c8_i32_32 : i32 to vector<1x128xi32>
    %75 = arith.cmpi slt, %13, %74 : vector<1x128xi32>
    %76 = arith.andi %73, %75 : vector<1x128xi1>
    %77 = vector.broadcast %c1_i32 : i32 to vector<1x8xi32>
    %78 = arith.cmpi sgt, %14, %77 : vector<1x8xi32>
    %c8_i32_33 = arith.constant 8 : i32
    %79 = vector.broadcast %c8_i32_33 : i32 to vector<1x8xi32>
    %80 = arith.cmpi slt, %14, %79 : vector<1x8xi32>
    %81 = arith.andi %78, %80 : vector<1x8xi1>
    %82 = vector.broadcast %71 : vector<1x1xf32> to vector<1x128xf32>
    %83 = arith.mulf %58, %82 : vector<1x128xf32>
    %cst_34 = arith.constant 0.000000e+00 : f32
    %84 = vector.broadcast %cst_34 : f32 to vector<1x128xf32>
    %85 = arith.select %76, %83, %84 : vector<1x128xi1>, vector<1x128xf32>
    %86 = vector.broadcast %71 : vector<1x1xf32> to vector<1x8xf32>
    %87 = arith.mulf %60, %86 : vector<1x8xf32>
    %cst_35 = arith.constant 0.000000e+00 : f32
    %88 = vector.broadcast %cst_35 : f32 to vector<1x8xf32>
    %89 = arith.select %81, %87, %88 : vector<1x8xi1>, vector<1x8xf32>
    %c0_36 = arith.constant 0 : index
    %c0_37 = arith.constant 0 : index
    %90 = vector.load %arg5[%c0_36, %c0_37] : memref<8x128xf32, #tpu.memory_space<vmem>>, vector<8x128xf32>
    "tpu.trace_start"() <{level = 10 : i32, message = "ia,ib->ab"}> : () -> ()
    %cst_38 = arith.constant dense<0.000000e+00> : vector<8x128xf32>
    %91 = tpu.matmul %89, %58, %cst_38 {dimension_numbers = #tpu.dot_dimension_numbers<[0], [0], [1], [1], [0, 1, 1, 1], [], []>} : vector<1x8xf32>, vector<1x128xf32>, vector<8x128xf32> -> vector<8x128xf32>
    "tpu.trace_stop"() : () -> ()
    %92 = arith.subf %90, %91 : vector<8x128xf32>
    %c0_39 = arith.constant 0 : index
    %c0_40 = arith.constant 0 : index
    %93 = vector.load %arg5[%c0_39, %c0_40] : memref<8x128xf32, #tpu.memory_space<vmem>>, vector<8x128xf32>
    tpu.vector_store %arg5[%c0_39, %c0_40], %92 {strides = array<i32>} : memref<8x128xf32, #tpu.memory_space<vmem>>, vector<8x128xf32>,
    %94 = vector.broadcast %70 : vector<1x1xf32> to vector<1x128xf32>
    %95 = arith.mulf %85, %94 : vector<1x128xf32>
    %96 = arith.subf %56, %95 : vector<1x128xf32>
    %c2_i32 = arith.constant 2 : i32
    %97 = arith.index_cast %c2_i32 : i32 to index
    %c0_41 = arith.constant 0 : index
    %98 = vector.load %arg5[%97, %c0_41] : memref<8x128xf32, #tpu.memory_space<vmem>>, vector<1x128xf32>
    %99 = arith.index_cast %c2_i32 : i32 to index
    %c0_42 = arith.constant 0 : index
    %100 = vector.load %arg5[%99, %c0_42] : memref<8x128xf32, #tpu.memory_space<vmem>>, vector<1x8xf32>
    %101 = vector.broadcast %c2_i32 : i32 to vector<1x128xi32>
    %102 = arith.cmpi eq, %13, %101 : vector<1x128xi32>
    %cst_43 = arith.constant 0.000000e+00 : f32
    %103 = vector.broadcast %cst_43 : f32 to vector<1x128xf32>
    %104 = arith.select %102, %98, %103 : vector<1x128xi1>, vector<1x128xf32>
    %cst_44 = arith.constant dense<0.000000e+00> : vector<1xf32>
    %105 = vector.multi_reduction <add>, %104, %cst_44 [1] : vector<1x128xf32> to vector<1xf32>
    %106 = vector.shape_cast %105 : vector<1xf32> to vector<1x1xf32>
    %cst_45 = arith.constant 0.000000e+00 : f32
    %107 = vector.broadcast %cst_45 : f32 to vector<1x128xf32>
    %108 = arith.select %102, %96, %107 : vector<1x128xi1>, vector<1x128xf32>
    %cst_46 = arith.constant dense<0.000000e+00> : vector<1xf32>
    %109 = vector.multi_reduction <add>, %108, %cst_46 [1] : vector<1x128xf32> to vector<1xf32>
    %110 = vector.shape_cast %109 : vector<1xf32> to vector<1x1xf32>
    %111 = tpu.reciprocal %106 : vector<1x1xf32> -> vector<1x1xf32>
    %112 = vector.broadcast %c2_i32 : i32 to vector<1x128xi32>
    %113 = arith.cmpi sgt, %13, %112 : vector<1x128xi32>
    %c8_i32_47 = arith.constant 8 : i32
    %114 = vector.broadcast %c8_i32_47 : i32 to vector<1x128xi32>
    %115 = arith.cmpi slt, %13, %114 : vector<1x128xi32>
    %116 = arith.andi %113, %115 : vector<1x128xi1>
    %117 = vector.broadcast %c2_i32 : i32 to vector<1x8xi32>
    %118 = arith.cmpi sgt, %14, %117 : vector<1x8xi32>
    %c8_i32_48 = arith.constant 8 : i32
    %119 = vector.broadcast %c8_i32_48 : i32 to vector<1x8xi32>
    %120 = arith.cmpi slt, %14, %119 : vector<1x8xi32>
    %121 = arith.andi %118, %120 : vector<1x8xi1>
    %122 = vector.broadcast %111 : vector<1x1xf32> to vector<1x128xf32>
    %123 = arith.mulf %98, %122 : vector<1x128xf32>
    %cst_49 = arith.constant 0.000000e+00 : f32
    %124 = vector.broadcast %cst_49 : f32 to vector<1x128xf32>
    %125 = arith.select %116, %123, %124 : vector<1x128xi1>, vector<1x128xf32>
    %126 = vector.broadcast %111 : vector<1x1xf32> to vector<1x8xf32>
    %127 = arith.mulf %100, %126 : vector<1x8xf32>
    %cst_50 = arith.constant 0.000000e+00 : f32
    %128 = vector.broadcast %cst_50 : f32 to vector<1x8xf32>
    %129 = arith.select %121, %127, %128 : vector<1x8xi1>, vector<1x8xf32>
    %c0_51 = arith.constant 0 : index
    %c0_52 = arith.constant 0 : index
    %130 = vector.load %arg5[%c0_51, %c0_52] : memref<8x128xf32, #tpu.memory_space<vmem>>, vector<8x128xf32>
    "tpu.trace_start"() <{level = 10 : i32, message = "ia,ib->ab"}> : () -> ()
    %cst_53 = arith.constant dense<0.000000e+00> : vector<8x128xf32>
    %131 = tpu.matmul %129, %98, %cst_53 {dimension_numbers = #tpu.dot_dimension_numbers<[0], [0], [1], [1], [0, 1, 1, 1], [], []>} : vector<1x8xf32>, vector<1x128xf32>, vector<8x128xf32> -> vector<8x128xf32>
    "tpu.trace_stop"() : () -> ()
    %132 = arith.subf %130, %131 : vector<8x128xf32>
    %c0_54 = arith.constant 0 : index
    %c0_55 = arith.constant 0 : index
    %133 = vector.load %arg5[%c0_54, %c0_55] : memref<8x128xf32, #tpu.memory_space<vmem>>, vector<8x128xf32>
    tpu.vector_store %arg5[%c0_54, %c0_55], %132 {strides = array<i32>} : memref<8x128xf32, #tpu.memory_space<vmem>>, vector<8x128xf32>,
    %134 = vector.broadcast %110 : vector<1x1xf32> to vector<1x128xf32>
    %135 = arith.mulf %125, %134 : vector<1x128xf32>
    %136 = arith.subf %96, %135 : vector<1x128xf32>
    %c3_i32 = arith.constant 3 : i32
    %137 = arith.index_cast %c3_i32 : i32 to index
    %c0_56 = arith.constant 0 : index
    %138 = vector.load %arg5[%137, %c0_56] : memref<8x128xf32, #tpu.memory_space<vmem>>, vector<1x128xf32>
    %139 = arith.index_cast %c3_i32 : i32 to index
    %c0_57 = arith.constant 0 : index
    %140 = vector.load %arg5[%139, %c0_57] : memref<8x128xf32, #tpu.memory_space<vmem>>, vector<1x8xf32>
    %141 = vector.broadcast %c3_i32 : i32 to vector<1x128xi32>
    %142 = arith.cmpi eq, %13, %141 : vector<1x128xi32>
    %cst_58 = arith.constant 0.000000e+00 : f32
    %143 = vector.broadcast %cst_58 : f32 to vector<1x128xf32>
    %144 = arith.select %142, %138, %143 : vector<1x128xi1>, vector<1x128xf32>
    %cst_59 = arith.constant dense<0.000000e+00> : vector<1xf32>
    %145 = vector.multi_reduction <add>, %144, %cst_59 [1] : vector<1x128xf32> to vector<1xf32>
    %146 = vector.shape_cast %145 : vector<1xf32> to vector<1x1xf32>
    %cst_60 = arith.constant 0.000000e+00 : f32
    %147 = vector.broadcast %cst_60 : f32 to vector<1x128xf32>
    %148 = arith.select %142, %136, %147 : vector<1x128xi1>, vector<1x128xf32>
    %cst_61 = arith.constant dense<0.000000e+00> : vector<1xf32>
    %149 = vector.multi_reduction <add>, %148, %cst_61 [1] : vector<1x128xf32> to vector<1xf32>
    %150 = vector.shape_cast %149 : vector<1xf32> to vector<1x1xf32>
    %151 = tpu.reciprocal %146 : vector<1x1xf32> -> vector<1x1xf32>
    %152 = vector.broadcast %c3_i32 : i32 to vector<1x128xi32>
    %153 = arith.cmpi sgt, %13, %152 : vector<1x128xi32>
    %c8_i32_62 = arith.constant 8 : i32
    %154 = vector.broadcast %c8_i32_62 : i32 to vector<1x128xi32>
    %155 = arith.cmpi slt, %13, %154 : vector<1x128xi32>
    %156 = arith.andi %153, %155 : vector<1x128xi1>
    %157 = vector.broadcast %c3_i32 : i32 to vector<1x8xi32>
    %158 = arith.cmpi sgt, %14, %157 : vector<1x8xi32>
    %c8_i32_63 = arith.constant 8 : i32
    %159 = vector.broadcast %c8_i32_63 : i32 to vector<1x8xi32>
    %160 = arith.cmpi slt, %14, %159 : vector<1x8xi32>
    %161 = arith.andi %158, %160 : vector<1x8xi1>
    %162 = vector.broadcast %151 : vector<1x1xf32> to vector<1x128xf32>
    %163 = arith.mulf %138, %162 : vector<1x128xf32>
    %cst_64 = arith.constant 0.000000e+00 : f32
    %164 = vector.broadcast %cst_64 : f32 to vector<1x128xf32>
    %165 = arith.select %156, %163, %164 : vector<1x128xi1>, vector<1x128xf32>
    %166 = vector.broadcast %151 : vector<1x1xf32> to vector<1x8xf32>
    %167 = arith.mulf %140, %166 : vector<1x8xf32>
    %cst_65 = arith.constant 0.000000e+00 : f32
    %168 = vector.broadcast %cst_65 : f32 to vector<1x8xf32>
    %169 = arith.select %161, %167, %168 : vector<1x8xi1>, vector<1x8xf32>
    %c0_66 = arith.constant 0 : index
    %c0_67 = arith.constant 0 : index
    %170 = vector.load %arg5[%c0_66, %c0_67] : memref<8x128xf32, #tpu.memory_space<vmem>>, vector<8x128xf32>
    "tpu.trace_start"() <{level = 10 : i32, message = "ia,ib->ab"}> : () -> ()
    %cst_68 = arith.constant dense<0.000000e+00> : vector<8x128xf32>
    %171 = tpu.matmul %169, %138, %cst_68 {dimension_numbers = #tpu.dot_dimension_numbers<[0], [0], [1], [1], [0, 1, 1, 1], [], []>} : vector<1x8xf32>, vector<1x128xf32>, vector<8x128xf32> -> vector<8x128xf32>
    "tpu.trace_stop"() : () -> ()
    %172 = arith.subf %170, %171 : vector<8x128xf32>
    %c0_69 = arith.constant 0 : index
    %c0_70 = arith.constant 0 : index
    %173 = vector.load %arg5[%c0_69, %c0_70] : memref<8x128xf32, #tpu.memory_space<vmem>>, vector<8x128xf32>
    tpu.vector_store %arg5[%c0_69, %c0_70], %172 {strides = array<i32>} : memref<8x128xf32, #tpu.memory_space<vmem>>, vector<8x128xf32>,
    %174 = vector.broadcast %150 : vector<1x1xf32> to vector<1x128xf32>
    %175 = arith.mulf %165, %174 : vector<1x128xf32>
    %176 = arith.subf %136, %175 : vector<1x128xf32>
    %c4_i32 = arith.constant 4 : i32
    %177 = arith.index_cast %c4_i32 : i32 to index
    %c0_71 = arith.constant 0 : index
    %178 = vector.load %arg5[%177, %c0_71] : memref<8x128xf32, #tpu.memory_space<vmem>>, vector<1x128xf32>
    %179 = arith.index_cast %c4_i32 : i32 to index
    %c0_72 = arith.constant 0 : index
    %180 = vector.load %arg5[%179, %c0_72] : memref<8x128xf32, #tpu.memory_space<vmem>>, vector<1x8xf32>
    %181 = vector.broadcast %c4_i32 : i32 to vector<1x128xi32>
    %182 = arith.cmpi eq, %13, %181 : vector<1x128xi32>
    %cst_73 = arith.constant 0.000000e+00 : f32
    %183 = vector.broadcast %cst_73 : f32 to vector<1x128xf32>
    %184 = arith.select %182, %178, %183 : vector<1x128xi1>, vector<1x128xf32>
    %cst_74 = arith.constant dense<0.000000e+00> : vector<1xf32>
    %185 = vector.multi_reduction <add>, %184, %cst_74 [1] : vector<1x128xf32> to vector<1xf32>
    %186 = vector.shape_cast %185 : vector<1xf32> to vector<1x1xf32>
    %cst_75 = arith.constant 0.000000e+00 : f32
    %187 = vector.broadcast %cst_75 : f32 to vector<1x128xf32>
    %188 = arith.select %182, %176, %187 : vector<1x128xi1>, vector<1x128xf32>
    %cst_76 = arith.constant dense<0.000000e+00> : vector<1xf32>
    %189 = vector.multi_reduction <add>, %188, %cst_76 [1] : vector<1x128xf32> to vector<1xf32>
    %190 = vector.shape_cast %189 : vector<1xf32> to vector<1x1xf32>
    %191 = tpu.reciprocal %186 : vector<1x1xf32> -> vector<1x1xf32>
    %192 = vector.broadcast %c4_i32 : i32 to vector<1x128xi32>
    %193 = arith.cmpi sgt, %13, %192 : vector<1x128xi32>
    %c8_i32_77 = arith.constant 8 : i32
    %194 = vector.broadcast %c8_i32_77 : i32 to vector<1x128xi32>
    %195 = arith.cmpi slt, %13, %194 : vector<1x128xi32>
    %196 = arith.andi %193, %195 : vector<1x128xi1>
    %197 = vector.broadcast %c4_i32 : i32 to vector<1x8xi32>
    %198 = arith.cmpi sgt, %14, %197 : vector<1x8xi32>
    %c8_i32_78 = arith.constant 8 : i32
    %199 = vector.broadcast %c8_i32_78 : i32 to vector<1x8xi32>
    %200 = arith.cmpi slt, %14, %199 : vector<1x8xi32>
    %201 = arith.andi %198, %200 : vector<1x8xi1>
    %202 = vector.broadcast %191 : vector<1x1xf32> to vector<1x128xf32>
    %203 = arith.mulf %178, %202 : vector<1x128xf32>
    %cst_79 = arith.constant 0.000000e+00 : f32
    %204 = vector.broadcast %cst_79 : f32 to vector<1x128xf32>
    %205 = arith.select %196, %203, %204 : vector<1x128xi1>, vector<1x128xf32>
    %206 = vector.broadcast %191 : vector<1x1xf32> to vector<1x8xf32>
    %207 = arith.mulf %180, %206 : vector<1x8xf32>
    %cst_80 = arith.constant 0.000000e+00 : f32
    %208 = vector.broadcast %cst_80 : f32 to vector<1x8xf32>
    %209 = arith.select %201, %207, %208 : vector<1x8xi1>, vector<1x8xf32>
    %c0_81 = arith.constant 0 : index
    %c0_82 = arith.constant 0 : index
    %210 = vector.load %arg5[%c0_81, %c0_82] : memref<8x128xf32, #tpu.memory_space<vmem>>, vector<8x128xf32>
    "tpu.trace_start"() <{level = 10 : i32, message = "ia,ib->ab"}> : () -> ()
    %cst_83 = arith.constant dense<0.000000e+00> : vector<8x128xf32>
    %211 = tpu.matmul %209, %178, %cst_83 {dimension_numbers = #tpu.dot_dimension_numbers<[0], [0], [1], [1], [0, 1, 1, 1], [], []>} : vector<1x8xf32>, vector<1x128xf32>, vector<8x128xf32> -> vector<8x128xf32>
    "tpu.trace_stop"() : () -> ()
    %212 = arith.subf %210, %211 : vector<8x128xf32>
    %c0_84 = arith.constant 0 : index
    %c0_85 = arith.constant 0 : index
    %213 = vector.load %arg5[%c0_84, %c0_85] : memref<8x128xf32, #tpu.memory_space<vmem>>, vector<8x128xf32>
    tpu.vector_store %arg5[%c0_84, %c0_85], %212 {strides = array<i32>} : memref<8x128xf32, #tpu.memory_space<vmem>>, vector<8x128xf32>,
    %214 = vector.broadcast %190 : vector<1x1xf32> to vector<1x128xf32>
    %215 = arith.mulf %205, %214 : vector<1x128xf32>
    %216 = arith.subf %176, %215 : vector<1x128xf32>
    %c5_i32 = arith.constant 5 : i32
    %217 = arith.index_cast %c5_i32 : i32 to index
    %c0_86 = arith.constant 0 : index
    %218 = vector.load %arg5[%217, %c0_86] : memref<8x128xf32, #tpu.memory_space<vmem>>, vector<1x128xf32>
    %219 = arith.index_cast %c5_i32 : i32 to index
    %c0_87 = arith.constant 0 : index
    %220 = vector.load %arg5[%219, %c0_87] : memref<8x128xf32, #tpu.memory_space<vmem>>, vector<1x8xf32>
    %221 = vector.broadcast %c5_i32 : i32 to vector<1x128xi32>
    %222 = arith.cmpi eq, %13, %221 : vector<1x128xi32>
    %cst_88 = arith.constant 0.000000e+00 : f32
    %223 = vector.broadcast %cst_88 : f32 to vector<1x128xf32>
    %224 = arith.select %222, %218, %223 : vector<1x128xi1>, vector<1x128xf32>
    %cst_89 = arith.constant dense<0.000000e+00> : vector<1xf32>
    %225 = vector.multi_reduction <add>, %224, %cst_89 [1] : vector<1x128xf32> to vector<1xf32>
    %226 = vector.shape_cast %225 : vector<1xf32> to vector<1x1xf32>
    %cst_90 = arith.constant 0.000000e+00 : f32
    %227 = vector.broadcast %cst_90 : f32 to vector<1x128xf32>
    %228 = arith.select %222, %216, %227 : vector<1x128xi1>, vector<1x128xf32>
    %cst_91 = arith.constant dense<0.000000e+00> : vector<1xf32>
    %229 = vector.multi_reduction <add>, %228, %cst_91 [1] : vector<1x128xf32> to vector<1xf32>
    %230 = vector.shape_cast %229 : vector<1xf32> to vector<1x1xf32>
    %231 = tpu.reciprocal %226 : vector<1x1xf32> -> vector<1x1xf32>
    %232 = vector.broadcast %c5_i32 : i32 to vector<1x128xi32>
    %233 = arith.cmpi sgt, %13, %232 : vector<1x128xi32>
    %c8_i32_92 = arith.constant 8 : i32
    %234 = vector.broadcast %c8_i32_92 : i32 to vector<1x128xi32>
    %235 = arith.cmpi slt, %13, %234 : vector<1x128xi32>
    %236 = arith.andi %233, %235 : vector<1x128xi1>
    %237 = vector.broadcast %c5_i32 : i32 to vector<1x8xi32>
    %238 = arith.cmpi sgt, %14, %237 : vector<1x8xi32>
    %c8_i32_93 = arith.constant 8 : i32
    %239 = vector.broadcast %c8_i32_93 : i32 to vector<1x8xi32>
    %240 = arith.cmpi slt, %14, %239 : vector<1x8xi32>
    %241 = arith.andi %238, %240 : vector<1x8xi1>
    %242 = vector.broadcast %231 : vector<1x1xf32> to vector<1x128xf32>
    %243 = arith.mulf %218, %242 : vector<1x128xf32>
    %cst_94 = arith.constant 0.000000e+00 : f32
    %244 = vector.broadcast %cst_94 : f32 to vector<1x128xf32>
    %245 = arith.select %236, %243, %244 : vector<1x128xi1>, vector<1x128xf32>
    %246 = vector.broadcast %231 : vector<1x1xf32> to vector<1x8xf32>
    %247 = arith.mulf %220, %246 : vector<1x8xf32>
    %cst_95 = arith.constant 0.000000e+00 : f32
    %248 = vector.broadcast %cst_95 : f32 to vector<1x8xf32>
    %249 = arith.select %241, %247, %248 : vector<1x8xi1>, vector<1x8xf32>
    %c0_96 = arith.constant 0 : index
    %c0_97 = arith.constant 0 : index
    %250 = vector.load %arg5[%c0_96, %c0_97] : memref<8x128xf32, #tpu.memory_space<vmem>>, vector<8x128xf32>
    "tpu.trace_start"() <{level = 10 : i32, message = "ia,ib->ab"}> : () -> ()
    %cst_98 = arith.constant dense<0.000000e+00> : vector<8x128xf32>
    %251 = tpu.matmul %249, %218, %cst_98 {dimension_numbers = #tpu.dot_dimension_numbers<[0], [0], [1], [1], [0, 1, 1, 1], [], []>} : vector<1x8xf32>, vector<1x128xf32>, vector<8x128xf32> -> vector<8x128xf32>
    "tpu.trace_stop"() : () -> ()
    %252 = arith.subf %250, %251 : vector<8x128xf32>
    %c0_99 = arith.constant 0 : index
    %c0_100 = arith.constant 0 : index
    %253 = vector.load %arg5[%c0_99, %c0_100] : memref<8x128xf32, #tpu.memory_space<vmem>>, vector<8x128xf32>
    tpu.vector_store %arg5[%c0_99, %c0_100], %252 {strides = array<i32>} : memref<8x128xf32, #tpu.memory_space<vmem>>, vector<8x128xf32>,
    %254 = vector.broadcast %230 : vector<1x1xf32> to vector<1x128xf32>
    %255 = arith.mulf %245, %254 : vector<1x128xf32>
    %256 = arith.subf %216, %255 : vector<1x128xf32>
    %c6_i32 = arith.constant 6 : i32
    %257 = arith.index_cast %c6_i32 : i32 to index
    %c0_101 = arith.constant 0 : index
    %258 = vector.load %arg5[%257, %c0_101] : memref<8x128xf32, #tpu.memory_space<vmem>>, vector<1x128xf32>
    %259 = arith.index_cast %c6_i32 : i32 to index
    %c0_102 = arith.constant 0 : index
    %260 = vector.load %arg5[%259, %c0_102] : memref<8x128xf32, #tpu.memory_space<vmem>>, vector<1x8xf32>
    %261 = vector.broadcast %c6_i32 : i32 to vector<1x128xi32>
    %262 = arith.cmpi eq, %13, %261 : vector<1x128xi32>
    %cst_103 = arith.constant 0.000000e+00 : f32
    %263 = vector.broadcast %cst_103 : f32 to vector<1x128xf32>
    %264 = arith.select %262, %258, %263 : vector<1x128xi1>, vector<1x128xf32>
    %cst_104 = arith.constant dense<0.000000e+00> : vector<1xf32>
    %265 = vector.multi_reduction <add>, %264, %cst_104 [1] : vector<1x128xf32> to vector<1xf32>
    %266 = vector.shape_cast %265 : vector<1xf32> to vector<1x1xf32>
    %cst_105 = arith.constant 0.000000e+00 : f32
    %267 = vector.broadcast %cst_105 : f32 to vector<1x128xf32>
    %268 = arith.select %262, %256, %267 : vector<1x128xi1>, vector<1x128xf32>
    %cst_106 = arith.constant dense<0.000000e+00> : vector<1xf32>
    %269 = vector.multi_reduction <add>, %268, %cst_106 [1] : vector<1x128xf32> to vector<1xf32>
    %270 = vector.shape_cast %269 : vector<1xf32> to vector<1x1xf32>
    %271 = tpu.reciprocal %266 : vector<1x1xf32> -> vector<1x1xf32>
    %272 = vector.broadcast %c6_i32 : i32 to vector<1x128xi32>
    %273 = arith.cmpi sgt, %13, %272 : vector<1x128xi32>
    %c8_i32_107 = arith.constant 8 : i32
    %274 = vector.broadcast %c8_i32_107 : i32 to vector<1x128xi32>
    %275 = arith.cmpi slt, %13, %274 : vector<1x128xi32>
    %276 = arith.andi %273, %275 : vector<1x128xi1>
    %277 = vector.broadcast %c6_i32 : i32 to vector<1x8xi32>
    %278 = arith.cmpi sgt, %14, %277 : vector<1x8xi32>
    %c8_i32_108 = arith.constant 8 : i32
    %279 = vector.broadcast %c8_i32_108 : i32 to vector<1x8xi32>
    %280 = arith.cmpi slt, %14, %279 : vector<1x8xi32>
    %281 = arith.andi %278, %280 : vector<1x8xi1>
    %282 = vector.broadcast %271 : vector<1x1xf32> to vector<1x128xf32>
    %283 = arith.mulf %258, %282 : vector<1x128xf32>
    %cst_109 = arith.constant 0.000000e+00 : f32
    %284 = vector.broadcast %cst_109 : f32 to vector<1x128xf32>
    %285 = arith.select %276, %283, %284 : vector<1x128xi1>, vector<1x128xf32>
    %286 = vector.broadcast %271 : vector<1x1xf32> to vector<1x8xf32>
    %287 = arith.mulf %260, %286 : vector<1x8xf32>
    %cst_110 = arith.constant 0.000000e+00 : f32
    %288 = vector.broadcast %cst_110 : f32 to vector<1x8xf32>
    %289 = arith.select %281, %287, %288 : vector<1x8xi1>, vector<1x8xf32>
    %c0_111 = arith.constant 0 : index
    %c0_112 = arith.constant 0 : index
    %290 = vector.load %arg5[%c0_111, %c0_112] : memref<8x128xf32, #tpu.memory_space<vmem>>, vector<8x128xf32>
    "tpu.trace_start"() <{level = 10 : i32, message = "ia,ib->ab"}> : () -> ()
    %cst_113 = arith.constant dense<0.000000e+00> : vector<8x128xf32>
    %291 = tpu.matmul %289, %258, %cst_113 {dimension_numbers = #tpu.dot_dimension_numbers<[0], [0], [1], [1], [0, 1, 1, 1], [], []>} : vector<1x8xf32>, vector<1x128xf32>, vector<8x128xf32> -> vector<8x128xf32>
    "tpu.trace_stop"() : () -> ()
    %292 = arith.subf %290, %291 : vector<8x128xf32>
    %c0_114 = arith.constant 0 : index
    %c0_115 = arith.constant 0 : index
    %293 = vector.load %arg5[%c0_114, %c0_115] : memref<8x128xf32, #tpu.memory_space<vmem>>, vector<8x128xf32>
    tpu.vector_store %arg5[%c0_114, %c0_115], %292 {strides = array<i32>} : memref<8x128xf32, #tpu.memory_space<vmem>>, vector<8x128xf32>,
    %294 = vector.broadcast %270 : vector<1x1xf32> to vector<1x128xf32>
    %295 = arith.mulf %285, %294 : vector<1x128xf32>
    %296 = arith.subf %256, %295 : vector<1x128xf32>
    %c7_i32 = arith.constant 7 : i32
    %297 = arith.subf %16, %296 : vector<1x128xf32>
    %c0_116 = arith.constant 0 : index
    %c0_117 = arith.constant 0 : index
    %c0_118 = arith.constant 0 : index
    %298 = vector.load %arg4[%c0_116, %c0_117, %c0_118] : memref<1x1x128xf32, #tpu.memory_space<vmem>>, vector<1x1x128xf32>
    %299 = vector.shape_cast %298 : vector<1x1x128xf32> to vector<1x128xf32>
    %300 = vector.shape_cast %297 : vector<1x128xf32> to vector<1x1x128xf32>
    tpu.vector_store %arg4[%c0_116, %c0_117, %c0_118], %300 {strides = array<i32>} : memref<1x1x128xf32, #tpu.memory_space<vmem>>, vector<1x1x128xf32>,
    return
  }
  func.func @transform_0(%arg0: i32) -> (i32, i32, i32) {
    %c0_i32 = arith.constant 0 : i32
    %c0_i32_0 = arith.constant 0 : i32
    %c0_i32_1 = arith.constant 0 : i32
    return %arg0, %c0_i32, %c0_i32_0 : i32, i32, i32
  }
  func.func @transform_1(%arg0: i32) -> (i32, i32, i32) {
    %c0_i32 = arith.constant 0 : i32
    %c0_i32_0 = arith.constant 0 : i32
    %c0_i32_1 = arith.constant 0 : i32
    return %arg0, %c0_i32, %c0_i32_0 : i32, i32, i32
  }
  func.func @transform_2(%arg0: i32) -> (i32, i32, i32) {
    %c0_i32 = arith.constant 0 : i32
    %c0_i32_0 = arith.constant 0 : i32
    %c0_i32_1 = arith.constant 0 : i32
    return %arg0, %c0_i32, %c0_i32_0 : i32, i32, i32
  }
  func.func @transform_3(%arg0: i32) -> (i32, i32, i32) {
    %c0_i32 = arith.constant 0 : i32
    %c0_i32_0 = arith.constant 0 : i32
    %c0_i32_1 = arith.constant 0 : i32
    return %arg0, %c0_i32, %c0_i32_0 : i32, i32, i32
  }
}

</mosaic_0001>

<bundles_post_ra>
// kernel: tpu_custom_call.1
= control target key start
LH: loop header
LB: loop body
LE: loop exit
PB: predicated region body
PF: predicated region fallthrough
CT: control target
= control target key end

     0   :  { %8 = vsyncpa [#allocation4], 0  ;;  %s2003_s0 = inlined_call_operand.hbm [shape: f32[2,8,32], index: 0, kind: input, shape index: {}]   ;;  %s2004_s1 = inlined_call_operand.hbm [shape: f32[2,32,128], index: 1, kind: input, shape index: {}]   ;;  %s2005_s2 = inlined_call_operand.vmem [shape: f32[2,1,128], index: 2, kind: input, shape index: {}]   ;;  %s2006_s3 = inlined_call_operand.hbm [shape: f32[2,1,128], index: 3, kind: output, shape index: {}]  }
   0x1   :  { %10 = vsyncpa [#allocation4 + $0x1], 0 }
   0x2   :  { %11 = vsyncpa [#allocation7], 0 }
   0x3   :  { %13 = vsyncpa [#allocation7 + $0x1], 0 }
   0x4   :  { %14 = vsyncpa [#allocation5], 0 }
   0x5   :  { %16 = vsyncpa [#allocation5 + $0x1], 0  ;;  %s1655_s12 = smov 0   ;;  %s1657_s13 = smov 0  }
   0x6   :  { %s1659_s14 = smov 0   ;;  %s1661_s15 = smov 0  }
   0x7 LB: > { %s1676_s16 = sadd.s32 4294967295, %s1626_s15   ;;  %s1338_s17 = sadd.s32 4294967294, %s1626_s15   ;;  %s1626_s15 = sphi %s1661_s15, %s2024_s15   ;;  %s1622_s14 = sphi %s1659_s14, %s2023_s14   ;;  %s1618_s13 = sphi %s1657_s13, %s2022_s13   ;;  %s1614_s12 = sphi %s1655_s12, %s2021_s12  }
   0x8   : > { %s1680_s18 = sadd.s32 1, %s1626_s15   ;;  %s29_s19 = sadd.s32 1, %s1622_s14 }
   0x9   : > { %s26_s20 = ssub.s32 %s1626_s15, %s1680_s18  ;;  %p36_p0 = scmp.ne.s32.totalorder %s1622_s14, %s1618_s13 }
   0xa   : > { %p27_p1 = scmp.eq.s32.totalorder %s26_s20, 0  ;;  %p37_p2 = scmp.eq.s32.totalorder %s1626_s15, 0 }
   0xb   : > { %p42_p3 = scmp.ne.s32.totalorder %s1618_s13, %s1614_s12  ;;  %p43_p4 = scmp.eq.s32.totalorder %s1676_s16, 0 }
   0xc   : > { %s1692_s21 = scalar_select %p27_p1, %s1622_s14, %s29_s19  }
   0xd   : > { %p1694_p5 = por %p37_p2, %p36_p0  ;;  %p1698_p6 = por %p43_p4, %p42_p3 }
   0xe   : > { %p118_p7 = scmp.eq.s32.totalorder %s1676_s16, 1  ;;  %p124_p8 = scmp.eq.s32.totalorder %s1338_s17, 1 }
   0xf   : > { %s2010_s23 = scalar_select %p1698_p6, 1, 0 }
  0x10   : > { %p1450_p10 = scmp.lt.s32.totalorder %s1626_s15, 2  ;;  %p1705_p11 = por %p118_p7, %p36_p0 }
  0x11   : > { %p1709_p12 = por %p124_p8, %p42_p3  ;;  %s1714_s26 = sand.u32 1, %s1622_s14  }
  0x12   : > { %s2011_s24 = scalar_select %p1705_p11, 1, 0 }
  0x13   : > { %s2012_s25 = scalar_select %p1709_p12, 1, 0 }
  0x14   : > { %s1342_s27 = sshll.u32 %s1626_s15, 7  ;;  %s1341_s28 = sshll.u32 %s1714_s26, 3 }
  0x15   : > { %s1721_s4 = scalar_lea.hbm %s2003_s0, %s1342_s27  ;;  %s148_s5 = scalar_lea.vmem [#allocation3], %s1341_s28 }
  0x16   : > { %s155_s6 = sshll.u32 %s148_s5, 4  ;;  %p1725_p13 = pnand %p1450_p10, %p1694_p5  ;;  %s1729_s6 = int_to_ptr.vmem [resolvable:$true] %s155_s6 }
  0x17   : > { %s145_s8 = scalar_lea.sflag [#allocation4], %s1714_s26  ;;  %s1502_s9 = scalar_lea.hbm %s1721_s4, 128 }
  0x18   : > { %p1503_p2 = scmp.ne.s32.totalorder %s1721_s4, %s1502_s9  ;;  %p1504_p3 = pneg %p1725_p13 }
  0x19   : > { %s1507_s17 = scalar_lea.hbm %s2003_s0, 256  ;;  %p1508_p5 = scmp.lt.s32.totalorder %s1721_s4, %s2003_s0 }
  0x1a   : > { %p1505_p4 = pnand %p1504_p3, %p1503_p2  ;;  %p1509_p8 = scmp.lt.s32.totalorder %s1507_s17, %s1502_s9 }
  0x1c   : > { %p1506_p7 = pneg %p1505_p4  ;;  %p1510_p10 = por %p1509_p8, %p1508_p5 }
  0x1e   : > { %p1511_p9 = pnand %p1510_p10, %p1506_p7 }
  0x20   : > { %1514 = shalt.err (!%p1511_p9)
}
  0x21   : > { %s1515_s22 = scalar_lea.vmem %s1729_s6, 128  ;;  %s1628_s27 = smov [#allocation3]  }
  0x22   : > { %p1516_p0 = scmp.ne.s32.totalorder %s1729_s6, %s1515_s22  ;;  %s1520_s28 = sshll.u32 %s1628_s27, 4  ;;  %s1521_s28 = int_to_ptr.vmem [resolvable:$false] %s1520_s28 }
  0x23   : > { %s1522_s29 = scalar_lea.vmem %s1521_s28, 256  ;;  %p1523_p1 = scmp.lt.s32.totalorder %s1729_s6, %s1521_s28 }
  0x24   : > { %p1518_p2 = pnand %p1516_p0, %p1504_p3  ;;  %p1524_p12 = scmp.lt.s32.totalorder %s1522_s29, %s1515_s22 }
  0x26   : > { %p1519_p4 = pneg %p1518_p2  ;;  %p1525_p11 = por %p1524_p12, %p1523_p1 }
  0x28   : > { %p1526_p5 = pnand %p1525_p11, %p1519_p4 }
  0x2a   : > { %1529 = shalt.err (!%p1526_p5)
}
  0x2b   : > { %1442 = dma.hbm_to_vmem [thread:$0]  (!%p1725_p13), %s1721_s4, 128, %s1729_s6, %s145_s8  }
  0x2c   : > { %p2014_p9 = scmp.lt.s32.totalorder %s1626_s15, 3  ;;  %p2015_p0 = scmp.ge.s32.totalorder %s1626_s15, 1 }
  0x2d   : > { %s1343_s5 = sshll.u32 %s1714_s26, 5  ;;  %s1367_s9 = sshll.u32 %s1626_s15, 9 }
  0x2e   : > { %p1762_p7 = pnand %p2015_p0, %p2014_p9  ;;  %s1771_s17 = scalar_lea.hbm %s2004_s1, %s1367_s9 }
  0x2f   : > { %s166_s19 = scalar_lea.vmem [#allocation6], %s1343_s5  ;;  %s163_s4 = scalar_lea.sflag [#allocation7], %s1714_s26 }
  0x30   : > { %s173_s20 = sshll.u32 %s166_s19, 4  ;;  %s1530_s6 = scalar_lea.hbm %s1771_s17, 512  ;;  %s1773_s20 = int_to_ptr.vmem [resolvable:$true] %s173_s20 }
  0x31   : > { %p1531_p11 = scmp.ne.s32.totalorder %s1771_s17, %s1530_s6  ;;  %s1535_s27 = scalar_lea.hbm %s2004_s1, 1024 }
  0x32   : > { %p1536_p8 = scmp.lt.s32.totalorder %s1771_s17, %s2004_s1  ;;  %p1537_p10 = scmp.lt.s32.totalorder %s1535_s27, %s1530_s6 }
  0x33   : > { %p1533_p12 = pnand %p1531_p11, %p1504_p3 }
  0x34   : > { %p1538_p2 = por %p1537_p10, %p1536_p8 }
  0x35   : > { %p1534_p1 = pneg %p1533_p12 }
  0x37   : > { %p1539_p4 = pnand %p1538_p2, %p1534_p1 }
  0x39   : > { %1542 = shalt.err (!%p1539_p4)
}
  0x3a   : > { %s1543_s5 = scalar_lea.vmem %s1773_s20, 512  ;;  %s1629_s9 = smov [#allocation6]  }
  0x3b   : > { %p1544_p5 = scmp.ne.s32.totalorder %s1773_s20, %s1543_s5  ;;  %s1548_s10 = sshll.u32 %s1629_s9, 4  ;;  %s1549_s10 = int_to_ptr.vmem [resolvable:$false] %s1548_s10 }
  0x3c   : > { %s1550_s11 = scalar_lea.vmem %s1549_s10, 1024  ;;  %p1551_p11 = scmp.lt.s32.totalorder %s1773_s20, %s1549_s10 }
  0x3d   : > { %p1546_p9 = pnand %p1544_p5, %p1504_p3  ;;  %p1552_p12 = scmp.lt.s32.totalorder %s1550_s11, %s1543_s5 }
  0x3f   : > { %p1547_p0 = pneg %p1546_p9  ;;  %p1553_p6 = por %p1552_p12, %p1551_p11 }
  0x41   : > { %p1554_p8 = pnand %p1553_p6, %p1547_p0 }
  0x43   : > { %1557 = shalt.err (!%p1554_p8)
}
  0x44   : > { %s1630_s19 = smov 128   ;;  %s1631_s6 = smov 8  }
  0x45   : > { %1445 = dma.hbm_to_vmem [thread:$0]  (!%p1725_p13), %s1771_s17, 512, %s1773_s20, %s163_s4, %s1630_s19, %s1630_s19, %s1631_s6  }
  0x46   : > { %191 = sbr.rel (%p1762_p7) target bundleno = 3934 (0xf5e), region = 32  ;;  %s1803_s8 = sand.u32 (!%p1762_p7), 1, %s1618_s13  }
  0x47   : > { %s1347_s22 = sshll.u32 (!%p1762_p7), %s1803_s8, 3  ;;  %s194_s27 = scalar_lea.sflag (!%p1762_p7), [#allocation4], %s1803_s8 }
  0x48   : > { %s197_s28 = scalar_lea.vmem (!%p1762_p7), [#allocation3], %s1347_s22  ;;  %p2017_p6 = scmp.ne.s32.totalorder (!%p1762_p7), %s2010_s23, 0 }
  0x4b   : > { %1601 = dma.done.wait (%p2017_p6), %s194_s27, 128  }
  0x4c   : > { %1603 = vsyncadd (%p2017_p6), %s194_s27, 4294967168  ;;  %s1348_s26 = sshll.u32 %s1803_s8, 5  ;;  %s203_s7 = scalar_lea.sflag [#allocation7], %s1803_s8 }
  0x4d   : > { %s206_s30 = scalar_lea.vmem [#allocation6], %s1348_s26 }
  0x4e   : > { %1605 = dma.done.wait (%p2017_p6), %s203_s7, 512  }
  0x4f   : > { %1607 = vsyncadd (%p2017_p6), %s203_s7, 4294966784  ;;  %v1632_v0 = vmov 0.0   ;;  %vm1633_vm0 = vmmov 0   ;;  %v243_v1 = vld [vmem:[%s206_s30 + $0x18] sm:$0xff]  ;;  %v242_v2 = vld [vmem:[%s206_s30 + $0x10] sm:$0xff]  ;;  %vm250_vm1 = vcmask 261120   ;;  %v244_v6 = vlaneseq }
  0x50   : > { %1387 = vmatprep.subr.mxu0 %v1632_v0  ;;  %1395 = vmatprep.mubr.msk.f32.mxu0 %vm1633_vm0, %v1632_v0  ;;  %v241_v3 = vld [vmem:[%s206_s30 + $0x8] sm:$0xff]  ;;  %v240_v4 = vld [vmem:[%s206_s30] sm:$0xff]  ;;  %v239_v5 = vld [vmem:[%s197_s28] sm:$0xff]  ;;  %vm329_vm3 = vcmask 1040384   ;;  %vm376_vm8 = vcmask 7168   ;;  %p236_p13 = scmp.lt.s32.totalorder %s1676_s16, 1 }
  0x51   : > { %1398 = vmatprep.subr.mxu1 %v1632_v0  ;;  %1400 = vmatprep.mubr.msk.f32.mxu1 %vm1633_vm0, %v1632_v0  ;;  %v245_v7 = vshrl.u32 %v244_v6, 7  ;;  %v1829_v8 = vand.u32 127, %v244_v6  ;;  %s1364_s29 = sshll.u32 %s1676_s16, 4  ;;  %s235_s5 = scalar_lea.vmem [#allocation8], %s1803_s8 }
  0x52   : > { %1388 = vmatpush3.msra.mxu0 %v243_v1  ;;  %s237_s23 = scalar_select %p236_p13, %s1676_s16, 1 }
  0x53   : > { %1389 = vmatprep.subr.mxu0 %v1632_v0  ;;  %vm248_vm2 = vcmp.eq.s32.totalorder %v245_v7, %v1829_v8  ;;  %vm327_vm4 = vcmp.eq.s32.totalorder %v1829_v8, 0  ;;  %vm338_vm5 = vcmp.gt.s32.totalorder %v1829_v8, 0  ;;  %vm339_vm6 = vcmp.lt.s32.totalorder %v1829_v8, 8  ;;  %s1240_s9 = sshll.u32 %s235_s5, 4  ;;  %s1238_s19 = scalar_lea.hbm %s2006_s3, %s1364_s29  ;;  %s1241_s9 = int_to_ptr.vmem [resolvable:$true] %s1240_s9 }
  0x54   : > { %1390 = vmatpush3.msra.mxu0 %v242_v2  ;;  %v249_v9 = vsel %vm248_vm2, 1.0, %v1632_v0  ;;  %vm340_vm7 = vmand %vm338_vm5, %vm339_vm6  ;;  %vm458_vm9 = vcmp.eq.s32.totalorder %v1829_v8, 1  ;;  %vm468_vm10 = vcmp.gt.s32.totalorder %v1829_v8, 1  ;;  %vm586_vm12 = vcmp.eq.s32.totalorder %v1829_v8, 2  ;;  %s238_s4 = scalar_lea.vmem %s2005_s2, %s237_s23  ;;  %s1228_s6 = scalar_lea.sflag [#allocation5], %s1803_s8 }
  0x55   : > { %1391 = vmatprep.subr.mxu0 %v1632_v0  ;;  %vm469_vm11 = vmand %vm468_vm10, %vm339_vm6  ;;  %vm596_vm13 = vcmp.gt.s32.totalorder %v1829_v8, 2  ;;  %vm714_vm15 = vcmp.eq.s32.totalorder %v1829_v8, 3  ;;  %vm842_vm5 = vcmp.eq.s32.totalorder %v1829_v8, 4  ;;  %s1558_s22 = scalar_lea.vmem %s1241_s9, 16  ;;  %p2018_p7 = scmp.ne.s32.totalorder %s2011_s24, 0 }
  0x56   : > { %1392 = vmatpush3.msra.mxu0 %v241_v3  ;;  %vm597_vm14 = vmand %vm596_vm13, %vm339_vm6  ;;  %p1559_p3 = scmp.ne.s32.totalorder %s1241_s9, %s1558_s22  ;;  %s1634_s27 = smov [#allocation8]  }
  0x57   : > { %1393 = vmatprep.subr.mxu0 %v1632_v0  ;;  %s1562_s28 = sshll.u32 %s1634_s27, 4  ;;  %s1563_s28 = int_to_ptr.vmem [resolvable:$false] %s1562_s28 }
  0x58   : > { %1394 = vmatpush3.msra.mxu0 %v240_v4  ;;  %p1560_p1 = pnand %p1559_p3, %p2018_p7  ;;  %s1564_s16 = scalar_lea.vmem %s1563_s28, 32 }
  0x59   : > { %1396 = vmatmul.mubr.msk.f32.vlgmr.msra.gmra.mxu0 %vm250_vm1, %v239_v5  ;;  %1413 = vmatprep.subr.mxu0 %v1632_v0  ;;  %vm724_vm1 = vcmp.gt.s32.totalorder %v1829_v8, 3  ;;  %p1565_p2 = scmp.lt.s32.totalorder %s1241_s9, %s1563_s28  ;;  %p1566_p4 = scmp.lt.s32.totalorder %s1564_s16, %s1558_s22 }
  0x5a   : > { %1415 = vmatprep.mubr.msk.f32.mxu0 %vm1633_vm0, %v1632_v0  ;;  %vm725_vm2 = vmand %vm724_vm1, %vm339_vm6  ;;  %p1561_p10 = pneg %p1560_p1 }
  0x5b   : > { %p1567_p5 = por %p1566_p4, %p1565_p2 }
  0x5d   : > { %p1568_p9 = pnand %p1567_p5, %p1561_p10 }
 0x119   : > { %v320_v10 = vpop.f32.mrf.mxu0 }
 0x11a   : > { %v321_v11 = vadd.f32 %v320_v10, %v249_v9 }
 0x11b   : > { %v1397_v12 = vpop.f32.mrf.mxu0 }
 0x11c   : > { %324 = vst [vmem:[#allocation2] sm:$0xff] %v321_v11  ;;  %v1925_v12 = vld [vmem:[%s238_s4] sm:$0x1] }
 0x123   : > { %v326_v13 = vld [vmem:[#allocation2] sm:$0x1] }
 0x124   : > { %1399 = vmatpush3.msk.msra.mxu1 %vm329_vm3, %v326_v13  ;;  %v328_v14 = vsel %vm327_vm4, %v326_v13, 0.0 }
 0x125   : > { %v330_v15 = vsel %vm329_vm3, %v328_v14, 0.0  ;;  %1403 = vmatprep.subr.mxu1 %v1632_v0 }
 0x126   : > { %331 = vadd.xlane.f32.xlu0 %v330_v15 }
 0x1af   : > { %v332_v16 = vpop.xlane.xlu0 %331 }
 0x1b0   : > { %1488 = vrcp.f32 %v332_v16 }
 0x1bd   : > { %v1489_v17 = vpop.eup %1488 }
 0x1be   : > { %v341_v18 = vmul.f32 %v1489_v17, %v326_v13  ;;  %v333_v13 = vsel %vm327_vm4, %v1925_v12, 0.0  ;;  %vm1098_vm4 = vcmp.eq.s32.totalorder %v1829_v8, 6 }
 0x1bf   : > { %v334_v14 = vsel %vm329_vm3, %v333_v13, 0.0 }
 0x1c0   : > { %v1843_v19 = vsel %vm340_vm7, %v341_v18, 0.0  ;;  %vm852_vm7 = vcmp.gt.s32.totalorder %v1829_v8, 4 }
 0x1c1   : > { %344 = vxpose.xlu0.b32.start.end [1/1] (short) (narrow) %v1843_v19, 8  ;;  %vm853_vm10 = vmand %vm852_vm7, %vm339_vm6 }
 0x23d   : > { %v360_v20 = vpop.trf.xlu0 }
 0x23e   : > { %1401 = vmatmul.mubr.msk.f32.vlgmr.msra.gmra.mxu1 %vm376_vm8, %v360_v20 }
 0x23f   : > { %1405 = vmatprep.mubr.msk.f32.mxu1 %vm1633_vm0, %v1632_v0 }
 0x2fe   : > { %v449_v21 = vpop.f32.mrf.mxu1 }
 0x2ff   : > { %v453_v22 = vsub.f32 %v321_v11, %v449_v21 }
 0x300   : > { %v1402_v23 = vpop.f32.mrf.mxu1 }
 0x301   : > { %454 = vst [vmem:[#allocation2] sm:$0xff] %v453_v22 }
 0x308   : > { %v457_v24 = vld [vmem:[#allocation2 + $0x1] sm:$0x1] }
 0x309   : > { %1404 = vmatpush3.msk.msra.mxu1 %vm329_vm3, %v457_v24  ;;  %v459_v25 = vsel %vm458_vm9, %v457_v24, 0.0 }
 0x30a   : > { %v460_v26 = vsel %vm329_vm3, %v459_v25, 0.0  ;;  %1408 = vmatprep.subr.mxu1 %v1632_v0 }
 0x30b   : > { %461 = vadd.xlane.f32.xlu1 %v460_v26 }
 0x394   : > { %v462_v27 = vpop.xlane.xlu1 %461 }
 0x395   : > { %1490 = vrcp.f32 %v462_v27 }
 0x3a2   : > { %v1491_v28 = vpop.eup %1490 }
 0x3a3   : > { %v470_v29 = vmul.f32 %v1491_v28, %v457_v24 }
 0x3a5   : > { %v1858_v30 = vsel %vm469_vm11, %v470_v29, 0.0  ;;  %vm970_vm11 = vcmp.eq.s32.totalorder %v1829_v8, 5 }
 0x3a6   : > { %473 = vxpose.xlu1.b32.start.end [1/1] (short) (narrow) %v1858_v30, 8 }
 0x422   : > { %v489_v31 = vpop.trf.xlu1 }
 0x423   : > { %1406 = vmatmul.mubr.msk.f32.vlgmr.msra.gmra.mxu1 %vm376_vm8, %v489_v31 }
 0x424   : > { %1410 = vmatprep.mubr.msk.f32.mxu1 %vm1633_vm0, %v1632_v0 }
 0x4e3   : > { %v577_v32 = vpop.f32.mrf.mxu1 }
 0x4e4   : > { %v581_v33 = vsub.f32 %v453_v22, %v577_v32 }
 0x4e5   : > { %v1407_v34 = vpop.f32.mrf.mxu1 }
 0x4e6   : > { %582 = vst [vmem:[#allocation2] sm:$0xff] %v581_v33 }
 0x4ed   : > { %v585_v35 = vld [vmem:[#allocation2 + $0x2] sm:$0x1] }
 0x4ee   : > { %1409 = vmatpush3.msk.msra.mxu1 %vm329_vm3, %v585_v35  ;;  %v587_v36 = vsel %vm586_vm12, %v585_v35, 0.0 }
 0x4ef   : > { %v588_v37 = vsel %vm329_vm3, %v587_v36, 0.0  ;;  %1418 = vmatprep.subr.mxu1 %v1632_v0 }
 0x4f0   : > { %589 = vadd.xlane.f32.xlu0 %v588_v37 }
 0x579   : > { %v590_v38 = vpop.xlane.xlu0 %589 }
 0x57a   : > { %1492 = vrcp.f32 %v590_v38 }
 0x587   : > { %v1493_v39 = vpop.eup %1492 }
 0x588   : > { %v598_v40 = vmul.f32 %v1493_v39, %v585_v35 }
 0x58a   : > { %v1873_v41 = vsel %vm597_vm14, %v598_v40, 0.0 }
 0x58b   : > { %601 = vxpose.xlu1.b32.start.end [1/1] (short) (narrow) %v1873_v41, 8 }
 0x607   : > { %v617_v42 = vpop.trf.xlu1 }
 0x608   : > { %1411 = vmatmul.mubr.msk.f32.vlgmr.msra.gmra.mxu1 %vm376_vm8, %v617_v42 }
 0x609   : > { %1420 = vmatprep.mubr.msk.f32.mxu1 %vm1633_vm0, %v1632_v0 }
 0x6c8   : > { %v705_v43 = vpop.f32.mrf.mxu1 }
 0x6c9   : > { %v709_v44 = vsub.f32 %v581_v33, %v705_v43 }
 0x6ca   : > { %v1412_v45 = vpop.f32.mrf.mxu1 }
 0x6cb   : > { %710 = vst [vmem:[#allocation2] sm:$0xff] %v709_v44 }
 0x6d2   : > { %v713_v46 = vld [vmem:[#allocation2 + $0x3] sm:$0x1] }
 0x6d3   : > { %1414 = vmatpush3.msk.msra.mxu0 %vm329_vm3, %v713_v46  ;;  %v715_v47 = vsel %vm714_vm15, %v713_v46, 0.0 }
 0x6d4   : > { %v716_v48 = vsel %vm329_vm3, %v715_v47, 0.0  ;;  %1423 = vmatprep.subr.mxu0 %v1632_v0 }
 0x6d5   : > { %717 = vadd.xlane.f32.xlu1 %v716_v48 }
 0x75e   : > { %v718_v49 = vpop.xlane.xlu1 %717 }
 0x75f   : > { %1494 = vrcp.f32 %v718_v49 }
 0x76c   : > { %v1495_v50 = vpop.eup %1494 }
 0x76d   : > { %v726_v51 = vmul.f32 %v1495_v50, %v713_v46 }
 0x76f   : > { %v1888_v52 = vsel %vm725_vm2, %v726_v51, 0.0 }
 0x770   : > { %729 = vxpose.xlu0.b32.start.end [1/1] (short) (narrow) %v1888_v52, 8 }
 0x7ec   : > { %v745_v53 = vpop.trf.xlu0 }
 0x7ed   : > { %1416 = vmatmul.mubr.msk.f32.vlgmr.msra.gmra.mxu0 %vm376_vm8, %v745_v53 }
 0x7ee   : > { %1425 = vmatprep.mubr.msk.f32.mxu0 %vm1633_vm0, %v1632_v0 }
 0x8ad   : > { %v833_v54 = vpop.f32.mrf.mxu0 }
 0x8ae   : > { %v837_v55 = vsub.f32 %v709_v44, %v833_v54 }
 0x8af   : > { %v1417_v56 = vpop.f32.mrf.mxu0 }
 0x8b0   : > { %838 = vst [vmem:[#allocation2] sm:$0xff] %v837_v55 }
 0x8b7   : > { %v841_v57 = vld [vmem:[#allocation2 + $0x4] sm:$0x1] }
 0x8b8   : > { %1419 = vmatpush3.msk.msra.mxu1 %vm329_vm3, %v841_v57  ;;  %v843_v58 = vsel %vm842_vm5, %v841_v57, 0.0 }
 0x8b9   : > { %v844_v59 = vsel %vm329_vm3, %v843_v58, 0.0  ;;  %1428 = vmatprep.subr.mxu1 %v1632_v0 }
 0x8ba   : > { %845 = vadd.xlane.f32.xlu1 %v844_v59 }
 0x943   : > { %v846_v60 = vpop.xlane.xlu1 %845 }
 0x944   : > { %1496 = vrcp.f32 %v846_v60 }
 0x951   : > { %v1497_v61 = vpop.eup %1496 }
 0x952   : > { %v854_v62 = vmul.f32 %v1497_v61, %v841_v57 }
 0x954   : > { %v1903_v63 = vsel %vm853_vm10, %v854_v62, 0.0 }
 0x955   : > { %857 = vxpose.xlu1.b32.start.end [1/1] (short) (narrow) %v1903_v63, 8 }
 0x9d1   : > { %v873_v1 = vpop.trf.xlu1 }
 0x9d2   : > { %1421 = vmatmul.mubr.msk.f32.vlgmr.msra.gmra.mxu1 %vm376_vm8, %v873_v1 }
 0x9d3   : > { %1430 = vmatprep.mubr.msk.f32.mxu1 %vm1633_vm0, %v1632_v0  ;;  %vm980_vm0 = vcmp.gt.s32.totalorder %v1829_v8, 5 }
 0x9d4   : > { %vm981_vm13 = vmand %vm980_vm0, %vm339_vm6 }
 0xa92   : > { %v961_v2 = vpop.f32.mrf.mxu1 }
 0xa93   : > { %v965_v3 = vsub.f32 %v837_v55, %v961_v2 }
 0xa94   : > { %v1422_v4 = vpop.f32.mrf.mxu1 }
 0xa95   : > { %966 = vst [vmem:[#allocation2] sm:$0xff] %v965_v3 }
 0xa9c   : > { %v969_v5 = vld [vmem:[#allocation2 + $0x5] sm:$0x1] }
 0xa9d   : > { %1424 = vmatpush3.msk.msra.mxu0 %vm329_vm3, %v969_v5  ;;  %v971_v6 = vsel %vm970_vm11, %v969_v5, 0.0 }
 0xa9e   : > { %v972_v7 = vsel %vm329_vm3, %v971_v6, 0.0 }
 0xa9f   : > { %973 = vadd.xlane.f32.xlu0 %v972_v7 }
 0xb28   : > { %v974_v9 = vpop.xlane.xlu0 %973 }
 0xb29   : > { %1498 = vrcp.f32 %v974_v9 }
 0xb36   : > { %v1499_v0 = vpop.eup %1498 }
 0xb37   : > { %v982_v10 = vmul.f32 %v1499_v0, %v969_v5 }
 0xb39   : > { %v1917_v11 = vsel %vm981_vm13, %v982_v10, 0.0 }
 0xb3a   : > { %985 = vxpose.xlu1.b32.start.end [1/1] (short) (narrow) %v1917_v11, 8 }
 0xb61   : > { %335 = vadd.xlane.f32.xlu1 %v334_v14 }
 0xbb6   : > { %v1001_v15 = vpop.trf.xlu1 }
 0xbb7   : > { %1426 = vmatmul.mubr.msk.f32.vlgmr.msra.gmra.mxu0 %vm376_vm8, %v1001_v15 }
 0xbea   : > { %v336_v16 = vpop.xlane.xlu1 %335 }
 0xbeb   : > { %v455_v17 = vmul.f32 %v1843_v19, %v336_v16 }
 0xbed   : > { %v456_v18 = vsub.f32 %v1925_v12, %v455_v17 }
 0xbef   : > { %v463_v20 = vsel %vm458_vm9, %v456_v18, 0.0  ;;  %vm1108_vm9 = vcmp.gt.s32.totalorder %v1829_v8, 6 }
 0xbf0   : > { %v464_v21 = vsel %vm329_vm3, %v463_v20, 0.0 }
 0xbf1   : > { %465 = vadd.xlane.f32.xlu0 %v464_v21 }
 0xc77   : > { %v1089_v22 = vpop.f32.mrf.mxu0 }
 0xc78   : > { %v1093_v23 = vsub.f32 %v965_v3, %v1089_v22 }
 0xc79   : > { %v1427_v24 = vpop.f32.mrf.mxu0 }
 0xc7a   : > { %1094 = vst [vmem:[#allocation2] sm:$0xff] %v1093_v23  ;;  %v466_v25 = vpop.xlane.xlu0 %465 }
 0xc7b   : > { %v583_v26 = vmul.f32 %v1858_v30, %v466_v25 }
 0xc7d   : > { %v584_v27 = vsub.f32 %v456_v18, %v583_v26 }
 0xc7f   : > { %v591_v28 = vsel %vm586_vm12, %v584_v27, 0.0  ;;  %vm1109_vm12 = vmand %vm1108_vm9, %vm339_vm6 }
 0xc80   : > { %v592_v19 = vsel %vm329_vm3, %v591_v28, 0.0 }
 0xc81   : > { %593 = vadd.xlane.f32.xlu0 %v592_v19  ;;  %v1097_v29 = vld [vmem:[#allocation2 + $0x6] sm:$0x1] }
 0xc82   : > { %1429 = vmatpush3.msk.msra.mxu1 %vm329_vm3, %v1097_v29  ;;  %v1099_v31 = vsel %vm1098_vm4, %v1097_v29, 0.0 }
 0xc83   : > { %v1100_v32 = vsel %vm329_vm3, %v1099_v31, 0.0 }
 0xc85   : > { %1101 = vadd.xlane.f32.xlu0 %v1100_v32 }
 0xd0a   : > { %v594_v33 = vpop.xlane.xlu0 %593 }
 0xd0b   : > { %v711_v30 = vmul.f32 %v1873_v41, %v594_v33 }
 0xd0d   : > { %v712_v34 = vsub.f32 %v584_v27, %v711_v30 }
 0xd0e   : > { %v1102_v37 = vpop.xlane.xlu0 %1101 }
 0xd0f   : > { %v719_v35 = vsel %vm714_vm15, %v712_v34, 0.0  ;;  %1500 = vrcp.f32 %v1102_v37 }
 0xd10   : > { %v720_v36 = vsel %vm329_vm3, %v719_v35, 0.0 }
 0xd11   : > { %721 = vadd.xlane.f32.xlu0 %v720_v36 }
 0xd1c   : > { %v1501_v38 = vpop.eup %1500 }
 0xd1d   : > { %v1110_v39 = vmul.f32 %v1501_v38, %v1097_v29 }
 0xd1f   : > { %v1111_v40 = vsel %vm1109_vm12, %v1110_v39, 0.0 }
 0xd3e   : > { %1113 = vxpose.xlu0.b32.start.end [1/1] (short) (narrow) %v1111_v40, 8 }
 0xd9a   : > { %v722_v42 = vpop.xlane.xlu0 %721 }
 0xd9b   : > { %v839_v41 = vmul.f32 %v1888_v52, %v722_v42 }
 0xd9d   : > { %v840_v43 = vsub.f32 %v712_v34, %v839_v41 }
 0xd9f   : > { %v847_v44 = vsel %vm842_vm5, %v840_v43, 0.0 }
 0xda0   : > { %v848_v45 = vsel %vm329_vm3, %v847_v44, 0.0 }
 0xda1   : > { %849 = vadd.xlane.f32.xlu1 %v848_v45 }
 0xdba   : > { %v1129_v46 = vpop.trf.xlu0 }
 0xdbb   : > { %1431 = vmatmul.mubr.msk.f32.vlgmr.msra.gmra.mxu1 %vm376_vm8, %v1129_v46 }
 0xe2a   : > { %v850_v47 = vpop.xlane.xlu1 %849 }
 0xe2b   : > { %v967_v48 = vmul.f32 %v1903_v63, %v850_v47 }
 0xe2d   : > { %v968_v49 = vsub.f32 %v840_v43, %v967_v48 }
 0xe2f   : > { %v975_v50 = vsel %vm970_vm11, %v968_v49, 0.0 }
 0xe30   : > { %v976_v51 = vsel %vm329_vm3, %v975_v50, 0.0 }
 0xe31   : > { %977 = vadd.xlane.f32.xlu1 %v976_v51 }
 0xe7b   : > { %v1217_v52 = vpop.f32.mrf.mxu1 }
 0xe7c   : > { %v1221_v53 = vsub.f32 %v1093_v23, %v1217_v52 }
 0xe7d   : > { %v1432_v54 = vpop.f32.mrf.mxu1 }
 0xe7e   : > { %1222 = vst [vmem:[#allocation2] sm:$0xff] %v1221_v53 }
 0xeba   : > { %v978_v55 = vpop.xlane.xlu1 %977 }
 0xebb   : > { %v1095_v56 = vmul.f32 %v1917_v11, %v978_v55 }
 0xebd   : > { %v1096_v57 = vsub.f32 %v968_v49, %v1095_v56 }
 0xebf   : > { %v1103_v58 = vsel %vm1098_vm4, %v1096_v57, 0.0 }
 0xec0   : > { %v1104_v59 = vsel %vm329_vm3, %v1103_v58, 0.0 }
 0xec1   : > { %1105 = vadd.xlane.f32.xlu1 %v1104_v59 }
 0xf4a   : > { %v1106_v60 = vpop.xlane.xlu1 %1105 }
 0xf4b   : > { %v1223_v61 = vmul.f32 %v1111_v40, %v1106_v60 }
 0xf4d   : > { %v1224_v62 = vsub.f32 %v1096_v57, %v1223_v61 }
 0xf4f   : > { %v1225_v63 = vsub.f32 %v1925_v12, %v1224_v62 }
 0xf51   : > { %1226 = vst [vmem:[%s235_s5] sm:$0x1] %v1225_v63 }
 0xf52   : > { %1571 = shalt.err (!%p1568_p9)
}
 0xf53   : > { %s1572_s26 = scalar_lea.hbm %s1238_s19, 16  ;;  %s1576_s30 = scalar_lea.hbm %s2006_s3, 32 }
 0xf54   : > { %p1573_p0 = scmp.ne.s32.totalorder %s1238_s19, %s1572_s26  ;;  %p1577_p8 = scmp.lt.s32.totalorder %s1238_s19, %s2006_s3 }
 0xf55   : > { %p1578_p6 = scmp.lt.s32.totalorder %s1576_s30, %s1572_s26 }
 0xf56   : > { %p1574_p11 = pnand %p1573_p0, %p2018_p7 }
 0xf57   : > { %p1579_p13 = por %p1578_p6, %p1577_p8 }
 0xf58   : > { %p1575_p12 = pneg %p1574_p11 }
 0xf5a   : > { %p1580_p3 = pnand %p1579_p13, %p1575_p12 }
 0xf5c   : > { %1583 = shalt.err (!%p1580_p3)
}
 0xf5d   : > { %1437 = dma.vmem_to_hbm [thread:$0]  (%p2018_p7), %s1241_s9, 16, %s1238_s19, %s1228_s6  }
 0xf5e PF: > { %s1252_s20 = sand.u32 1, %s1614_s12   ;;  %p2019_p1 = scmp.ne.s32.totalorder %s2012_s25, 0 }
 0xf5f   : > { %p2020_p10 = scmp.ge.s32.totalorder %s1626_s15, 2  ;;  %s1253_s4 = scalar_lea.sflag [#allocation5], %s1252_s20 }
 0xf61   : > { %p1447_p2 = pnand %p2020_p10, %p2019_p1 }
 0xf63   : > { %p1448_p4 = pneg %p1447_p2 }
 0xf65   : > { %1609 = dma.done.wait (%p1448_p4), %s1253_s4, 16  }
 0xf66   : > { %1611 = vsyncadd (%p1448_p4), %s1253_s4, 4294967280  ;;  %p19_p5 = scmp.ge.s32.totalorder %s1680_s18, 4   ;;  %s2021_s12 = smov %s1618_s13 }
 0xf67   : > { %s2022_s13 = smov %s1622_s14  ;;  %s2023_s14 = smov %s1692_s21 }
 0xf68   : > { %s2024_s15 = smov %s1680_s18  ;;  %21 = sbr.rel (!%p19_p5) target bundleno = 7 (0x7), region = 93 }
 0xf6d   :  { %1257 = vsyncpa [#allocation4], 1 }
 0xf6e   :  { %1259 = vsyncpa [#allocation4 + $0x1], 1 }
 0xf6f   :  { %1260 = vsyncpa [#allocation7], 1 }
 0xf70   :  { %1262 = vsyncpa [#allocation7 + $0x1], 1 }
 0xf71   :  { %1263 = vsyncpa [#allocation5], 1 }
 0xf72   :  { %1265 = vsyncpa [#allocation5 + $0x1], 1 }

</bundles_post_ra>
